<compile_context>
chip_gen: v7x
topology: tpu7x:2x2x1
jax: 0.10.0
libtpu: 0.0.40
codegen_flags: <defaults>
</compile_context>

<pallas_src>
import math
import functools

import jax
import jax.numpy as jnp
from jax.experimental import pallas as pl
from jax.experimental.pallas import tpu as pltpu


def _layernorm(x, g, b, eps=1e-5):
    mu = jnp.mean(x, axis=-1, keepdims=True)
    var = jnp.mean((x - mu) ** 2, axis=-1, keepdims=True)
    return (x - mu) * jax.lax.rsqrt(var + eps) * g + b


# ---------------------------------------------------------------------------
# Kernel 1: per-(batch, T-block) K/V projection.
# Full-width (bt, C) @ (C, C) head-major matmuls; result is transposed once to
# (H, bt, hd) and written to the K/V caches consumed by the attention kernel.
# ---------------------------------------------------------------------------
def kv_proj_kernel(x_ref, ln1_g_ref, ln1_b_ref, wk_ref, bk_ref, wv_ref, bv_ref,
                   k_out_ref, v_out_ref, *, n_head, compute_dtype):
    f32 = jnp.float32
    x = x_ref[0].astype(f32)                                   # (bt, C)
    bt, C = x.shape
    hd = C // n_head

    h = _layernorm(x, ln1_g_ref[...], ln1_b_ref[...])
    hc = h.astype(compute_dtype)
    k = jnp.dot(hc, wk_ref[...], preferred_element_type=f32) + bk_ref[...]  # (bt, C)
    v = jnp.dot(hc, wv_ref[...], preferred_element_type=f32) + bv_ref[...]  # head-major cols

    k = jnp.transpose(k.astype(k_out_ref.dtype).reshape(bt, n_head, hd), (1, 0, 2))
    v = jnp.transpose(v.astype(v_out_ref.dtype).reshape(bt, n_head, hd), (1, 0, 2))
    k_out_ref[0] = k                                            # (H, bt, hd)
    v_out_ref[0] = v


# ---------------------------------------------------------------------------
# Kernel 2: per-(batch, q-block) causal attention (flash-style inner KV loop with
# causal block skipping) + residual + LayerNorm + MLP (exact GELU) + residual.
# ---------------------------------------------------------------------------
def attn_mlp_kernel(x_ref, k_ref, v_ref,
                    ln1_g_ref, ln1_b_ref, wq_ref, bq_ref, wproj_ref, bproj_ref,
                    ln2_g_ref, ln2_b_ref, wfc_ref, bfc_ref, wfc2_ref, bfc2_ref,
                    o_ref, *, n_head, block_q, compute_dtype):
    f32 = jnp.float32
    qi = pl.program_id(1)

    xq = x_ref[0].astype(f32)                                   # (tq, C)
    tq, C = xq.shape
    hd = C // n_head

    # ---- ln1 + Q projection (1/sqrt(hd) already folded into wq/bq in the wrapper) ----
    hq = _layernorm(xq, ln1_g_ref[...], ln1_b_ref[...])
    q2 = jnp.dot(hq.astype(compute_dtype), wq_ref[...],
                 preferred_element_type=f32) + bq_ref[...]      # (tq, C) head-major cols
    q_c = jnp.transpose(q2.astype(compute_dtype).reshape(tq, n_head, hd),
                        (1, 0, 2))                              # (H, tq, hd)

    # In-kernel additive mask for the DIAGONAL kv block only; off-diagonal blocks
    # (kv < qi) are fully visible, blocks with kv > qi are skipped entirely.
    r = jax.lax.broadcasted_iota(jnp.int32, (tq, block_q), 0)
    c = jax.lax.broadcasted_iota(jnp.int32, (tq, block_q), 1)
    diag_bias = jnp.where(c <= r, 0.0, -1e30).astype(f32)       # (tq, bkv), hoisted

    def body(kv, carry):
        m, l, acc = carry
        start = pl.multiple_of(kv * block_q, block_q)
        k_blk = k_ref[0, :, pl.ds(start, block_q), :]           # (H, bkv, hd)
        v_blk = v_ref[0, :, pl.ds(start, block_q), :]
        s = jnp.einsum('hqd,hkd->hqk', q_c, k_blk,
                       preferred_element_type=f32)              # (H, tq, bkv), f32
        is_diag = jnp.where(kv == qi, 1.0, 0.0).astype(f32)     # scalar
        s = s + (diag_bias * is_diag)[None]                     # mask kept in f32
        m_new = jnp.maximum(m, jnp.max(s, axis=-1, keepdims=True))
        alpha = jnp.exp(m - m_new)
        p = jnp.exp(s - m_new)
        l_new = alpha * l + jnp.sum(p, axis=-1, keepdims=True)
        acc_new = alpha * acc + jnp.einsum('hqk,hkd->hqd', p.astype(compute_dtype),
                                           v_blk, preferred_element_type=f32)
        return m_new, l_new, acc_new

    m0 = jnp.full((n_head, tq, 1), -jnp.inf, dtype=f32)
    l0 = jnp.zeros((n_head, tq, 1), dtype=f32)
    acc0 = jnp.zeros((n_head, tq, hd), dtype=f32)
    m, l, acc = jax.lax.fori_loop(0, qi + 1, body, (m0, l0, acc0))

    # every causal row has >= 1 unmasked key (its own position) so l > 0
    y = acc * pl.reciprocal(l, approx=True)                     # (H, tq, hd) f32

    # ---- output projection: full-width (tq, C) @ (C, C); no per-head sum ----
    y2 = jnp.transpose(y.astype(compute_dtype), (1, 0, 2)).reshape(tq, C)
    x1 = xq + jnp.dot(y2, wproj_ref[...],
                      preferred_element_type=f32) + bproj_ref[...]

    # ---- ln2 + MLP (Linear -> exact GELU -> Linear) ----
    h2 = _layernorm(x1, ln2_g_ref[...], ln2_b_ref[...])
    f = jnp.dot(h2.astype(compute_dtype), wfc_ref[...],
                preferred_element_type=f32) + bfc_ref[...]      # (tq, 4C)
    g = 0.5 * f * (1.0 + jax.lax.erf(f * (1.0 / math.sqrt(2.0))))   # exact GELU
    mlp = jnp.dot(g.astype(compute_dtype), wfc2_ref[...],
                  preferred_element_type=f32) + bfc2_ref[...]   # (tq, C)

    o_ref[0] = (x1 + mlp).astype(o_ref.dtype)


def _const_spec(arr):
    """BlockSpec for a grid-invariant weight/bias: constant index map, single buffer."""
    shape = tuple(arr.shape)
    zeros = (0,) * len(shape)

    def idx(*_):
        return zeros

    try:
        return pl.BlockSpec(shape, idx, pipeline_mode=pl.Buffered(1))
    except TypeError:   # older BlockSpec without `pipeline_mode` kwarg
        return pl.BlockSpec(shape, idx)


def _vmem_limit_bytes():
    # Leave headroom for compiler-internal scratch; v7x only has 64 MiB physical VMEM.
    try:
        cap = pltpu.get_tpu_info().vmem_capacity_bytes
        return max(32 * 1024 * 1024, int(cap) * 3 // 4)
    except Exception:   # hardware query unavailable (e.g. interpret mode)
        return 48 * 1024 * 1024


def block_forward(x, params, n_head, *, block_q=None, compute_dtype=jnp.bfloat16):
    B, T, C = x.shape
    assert C % n_head == 0
    hd = C // n_head
    if block_q is None:
        block_q = min(T, 128)
    block_q = min(block_q, T)
    assert T % block_q == 0, "T must be divisible by block_q"
    assert block_q % 8 == 0 or block_q == T
    num_q = T // block_q
    f32 = jnp.float32
    scale = 1.0 / math.sqrt(hd)

    (ln1_g, ln1_b, wkqv, bkqv, wproj, bproj,
     ln2_g, ln2_b, wfc, bfc, wfc2, bfc2) = params

    # ---- wrapper-side (free, XLA) weight re-layout to head-major (C, C) slabs ----
    # Fused layout (minGPT variant): output column = head*3*hd + {k|q|v}*hd + d
    w4 = wkqv.reshape(C, n_head, 3, hd)
    wk_hm = w4[:, :, 0, :].reshape(C, C).astype(compute_dtype)
    wq_hm = (w4[:, :, 1, :].reshape(C, C) * scale).astype(compute_dtype)  # scale folded
    wv_hm = w4[:, :, 2, :].reshape(C, C).astype(compute_dtype)
    b4 = bkqv.reshape(n_head, 3, hd)
    bk_hm = b4[:, 0, :].reshape(1, C).astype(f32)
    bq_hm = (b4[:, 1, :].reshape(1, C) * scale).astype(f32)               # scale folded
    bv_hm = b4[:, 2, :].reshape(1, C).astype(f32)

    ln1_g2 = ln1_g.reshape(1, C).astype(f32)
    ln1_b2 = ln1_b.reshape(1, C).astype(f32)
    ln2_g2 = ln2_g.reshape(1, C).astype(f32)
    ln2_b2 = ln2_b.reshape(1, C).astype(f32)
    wproj_c = wproj.astype(compute_dtype)            # already expects head-major input
    bproj2 = bproj.reshape(1, C).astype(f32)
    wfc_c = wfc.astype(compute_dtype)
    bfc_2d = bfc.reshape(1, 4 * C).astype(f32)
    wfc2_c = wfc2.astype(compute_dtype)
    bfc2_2d = bfc2.reshape(1, C).astype(f32)

    vmem_limit = _vmem_limit_bytes()

    # ---- pass 1: K/V projection into head-major caches (B, H, T, hd) ----
    kv_const = (ln1_g2, ln1_b2, wk_hm, bk_hm, wv_hm, bv_hm)
    kcache, vcache = pl.pallas_call(
        functools.partial(kv_proj_kernel, n_head=n_head, compute_dtype=compute_dtype),
        out_shape=(jax.ShapeDtypeStruct((B, n_head, T, hd), compute_dtype),
                   jax.ShapeDtypeStruct((B, n_head, T, hd), compute_dtype)),
        grid=(B, num_q),
        in_specs=[pl.BlockSpec((1, block_q, C), lambda b, t: (b, t, 0))]
                 + [_const_spec(a) for a in kv_const],
        out_specs=(pl.BlockSpec((1, n_head, block_q, hd), lambda b, t: (b, 0, t, 0)),
                   pl.BlockSpec((1, n_head, block_q, hd), lambda b, t: (b, 0, t, 0))),
        compiler_params=pltpu.CompilerParams(
            dimension_semantics=("parallel", "parallel"),
            vmem_limit_bytes=vmem_limit),
    )(x, *kv_const)

    # ---- pass 2: fused causal attention + MLP over query blocks ----
    attn_const = (ln1_g2, ln1_b2, wq_hm, bq_hm, wproj_c, bproj2,
                  ln2_g2, ln2_b2, wfc_c, bfc_2d, wfc2_c, bfc2_2d)
    return pl.pallas_call(
        functools.partial(attn_mlp_kernel, n_head=n_head, block_q=block_q,
                          compute_dtype=compute_dtype),
        out_shape=jax.ShapeDtypeStruct((B, T, C), x.dtype),
        grid=(B, num_q),
        in_specs=[pl.BlockSpec((1, block_q, C), lambda b, q: (b, q, 0)),
                  pl.BlockSpec((1, n_head, T, hd), lambda b, q: (b, 0, 0, 0)),
                  pl.BlockSpec((1, n_head, T, hd), lambda b, q: (b, 0, 0, 0))]
                 + [_const_spec(a) for a in attn_const],
        out_specs=pl.BlockSpec((1, block_q, C), lambda b, q: (b, q, 0)),
        compiler_params=pltpu.CompilerParams(
            dimension_semantics=("parallel", "parallel"),
            vmem_limit_bytes=vmem_limit),
    )(x, kcache, vcache, *attn_const)


def block_ref(x, params, n_head):
    # Pure-JAX f32 reference with the original module's semantics.
    (ln1_g, ln1_b, wkqv, bkqv, wproj, bproj,
     ln2_g, ln2_b, wfc, bfc, wfc2, bfc2) = params
    B, T, C = x.shape
    hd = C // n_head

    h = _layernorm(x, ln1_g, ln1_b)
    kqv = h @ wkqv + bkqv                              # (B, T, 3C)
    kqv = kqv.reshape(B, T, n_head, 3 * hd)
    k, q, v = kqv[..., :hd], kqv[..., hd:2 * hd], kqv[..., 2 * hd:]
    k = jnp.transpose(k, (0, 2, 1, 3))                 # (B, H, T, hd)
    q = jnp.transpose(q, (0, 2, 1, 3))
    v = jnp.transpose(v, (0, 2, 1, 3))
    att = jnp.einsum('bhqd,bhkd->bhqk', q, k) * (1.0 / math.sqrt(hd))
    mask = jnp.tril(jnp.ones((T, T), dtype=bool))
    att = jnp.where(mask[None, None], att, -jnp.inf)
    att = jax.nn.softmax(att, axis=-1)
    y = jnp.einsum('bhqk,bhkd->bhqd', att, v)
    y = jnp.transpose(y, (0, 2, 1, 3)).reshape(B, T, C)
    x1 = x + (y @ wproj + bproj)

    h2 = _layernorm(x1, ln2_g, ln2_b)
    f = h2 @ wfc + bfc
    g = 0.5 * f * (1.0 + jax.lax.erf(f / math.sqrt(2.0)))
    return x1 + (g @ wfc2 + bfc2)


if __name__ == "__main__":
    B, T, C, n_head = 2, 16, 32, 4          # block_size == T, head_dim == 8
    key = jax.random.PRNGKey(0)
    ks = jax.random.split(key, 12)

    def nrm(k, shape, scale=0.02):
        return jax.random.normal(k, shape, dtype=jnp.float32) * scale

    params = (
        1.0 + 0.1 * jax.random.normal(ks[0], (1, C), jnp.float32),   # ln1 gamma
        0.1 * jax.random.normal(ks[1], (1, C), jnp.float32),         # ln1 beta
        nrm(ks[2], (C, 3 * C)),                                      # kqv weight (in, out)
        nrm(ks[3], (1, 3 * C)),                                      # kqv bias
        nrm(ks[4], (C, C)),                                          # attn proj weight
        nrm(ks[5], (1, C)),                                          # attn proj bias
        1.0 + 0.1 * jax.random.normal(ks[6], (1, C), jnp.float32),   # ln2 gamma
        0.1 * jax.random.normal(ks[7], (1, C), jnp.float32),         # ln2 beta
        nrm(ks[8], (C, 4 * C)),                                      # mlp fc weight
        nrm(ks[9], (1, 4 * C)),                                      # mlp fc bias
        nrm(ks[10], (4 * C, C)),                                     # mlp proj weight
        nrm(ks[11], (1, C)),                                         # mlp proj bias
    )

    x = jax.random.normal(jax.random.PRNGKey(42), (B, T, C), dtype=jnp.float32)

    ref = jax.block_until_ready(block_ref(x, params, n_head))

    # 1) f32 compute path; block_q=8 -> 2 query blocks, exercising the KV-block loop
    #    (trip counts 1 and 2) and the two-pass K/V-cache design.
    out_f32 = jax.block_until_ready(
        block_forward(x, params, n_head, block_q=8, compute_dtype=jnp.float32))
    assert out_f32.shape == (B, T, C)
    err_f32 = float(jnp.max(jnp.abs(out_f32 - ref)))
    assert err_f32 < 1e-3, f"f32 kernel mismatch vs reference: {err_f32}"

    # 2) default perf configuration: bf16 matmul operands, f32 accumulation.
    out_bf16 = jax.block_until_ready(block_forward(x, params, n_head, block_q=8))
    err_bf16 = float(jnp.max(jnp.abs(out_bf16 - ref)))
    assert err_bf16 < 5e-3, f"bf16 kernel mismatch vs reference: {err_bf16}"

    print("KERNEL_OK")
</pallas_src>

<mosaic_0001>
module attributes {stable_mosaic.version = 11 : i64} {
  func.func @kv_proj_kernel(%arg0: i32, %arg1: i32, %arg2: memref<1x8x32xf32, #tpu.memory_space<vmem>>, %arg3: memref<1x32xf32, #tpu.memory_space<vmem>>, %arg4: memref<1x32xf32, #tpu.memory_space<vmem>>, %arg5: memref<32x32xf32, #tpu.memory_space<vmem>>, %arg6: memref<1x32xf32, #tpu.memory_space<vmem>>, %arg7: memref<32x32xf32, #tpu.memory_space<vmem>>, %arg8: memref<1x32xf32, #tpu.memory_space<vmem>>, %arg9: memref<1x4x8x8xf32, #tpu.memory_space<vmem>>, %arg10: memref<1x4x8x8xf32, #tpu.memory_space<vmem>>) attributes {dimension_semantics = [#tpu.dimension_semantics<parallel>, #tpu.dimension_semantics<parallel>], iteration_bounds = array<i64: 2, 2>, scalar_prefetch = 0 : i64, scratch_operands = 0 : i64, tpu.core_type = #tpu.core_type<tc>, window_params = [{transform_indices = @transform_0, window_bounds = array<i64: 1, 8, 32>}, {pipeline_mode = #tpu.pipeline_mode<synchronous>, transform_indices = @transform_1, window_bounds = array<i64: 1, 32>}, {pipeline_mode = #tpu.pipeline_mode<synchronous>, transform_indices = @transform_2, window_bounds = array<i64: 1, 32>}, {pipeline_mode = #tpu.pipeline_mode<synchronous>, transform_indices = @transform_3, window_bounds = array<i64: 32, 32>}, {pipeline_mode = #tpu.pipeline_mode<synchronous>, transform_indices = @transform_4, window_bounds = array<i64: 1, 32>}, {pipeline_mode = #tpu.pipeline_mode<synchronous>, transform_indices = @transform_5, window_bounds = array<i64: 32, 32>}, {pipeline_mode = #tpu.pipeline_mode<synchronous>, transform_indices = @transform_6, window_bounds = array<i64: 1, 32>}, {transform_indices = @transform_7, window_bounds = array<i64: 1, 4, 8, 8>}, {transform_indices = @transform_8, window_bounds = array<i64: 1, 4, 8, 8>}]} {
    %c0 = arith.constant 0 : index
    %c0_0 = arith.constant 0 : index
    %c0_1 = arith.constant 0 : index
    %0 = vector.load %arg2[%c0, %c0_0, %c0_1] : memref<1x8x32xf32, #tpu.memory_space<vmem>>, vector<1x8x32xf32>
    %1 = vector.shape_cast %0 : vector<1x8x32xf32> to vector<8x32xf32>
    %c0_2 = arith.constant 0 : index
    %c0_3 = arith.constant 0 : index
    %2 = vector.load %arg3[%c0_2, %c0_3] : memref<1x32xf32, #tpu.memory_space<vmem>>, vector<1x32xf32>
    %c0_4 = arith.constant 0 : index
    %c0_5 = arith.constant 0 : index
    %3 = vector.load %arg4[%c0_4, %c0_5] : memref<1x32xf32, #tpu.memory_space<vmem>>, vector<1x32xf32>
    %cst = arith.constant dense<0.000000e+00> : vector<8xf32>
    %4 = vector.multi_reduction <add>, %1, %cst [1] : vector<8x32xf32> to vector<8xf32>
    %5 = vector.shape_cast %4 : vector<8xf32> to vector<8x1xf32>
    %cst_6 = arith.constant 3.200000e+01 : f32
    %6 = vector.broadcast %cst_6 : f32 to vector<8x1xf32>
    %7 = arith.divf %5, %6 : vector<8x1xf32>
    %8 = vector.broadcast %7 : vector<8x1xf32> to vector<8x32xf32>
    %9 = arith.subf %1, %8 : vector<8x32xf32>
    %10 = arith.mulf %9, %9 : vector<8x32xf32>
    %cst_7 = arith.constant dense<0.000000e+00> : vector<8xf32>
    %11 = vector.multi_reduction <add>, %10, %cst_7 [1] : vector<8x32xf32> to vector<8xf32>
    %12 = vector.shape_cast %11 : vector<8xf32> to vector<8x1xf32>
    %cst_8 = arith.constant 3.200000e+01 : f32
    %13 = vector.broadcast %cst_8 : f32 to vector<8x1xf32>
    %14 = arith.divf %12, %13 : vector<8x1xf32>
    %15 = vector.broadcast %7 : vector<8x1xf32> to vector<8x32xf32>
    %16 = arith.subf %1, %15 : vector<8x32xf32>
    %cst_9 = arith.constant 9.99999974E-6 : f32
    %17 = vector.broadcast %cst_9 : f32 to vector<8x1xf32>
    %18 = arith.addf %14, %17 : vector<8x1xf32>
    %19 = math.rsqrt %18 : vector<8x1xf32>
    %20 = vector.broadcast %19 : vector<8x1xf32> to vector<8x32xf32>
    %21 = arith.mulf %16, %20 : vector<8x32xf32>
    %22 = vector.broadcast %2 : vector<1x32xf32> to vector<8x32xf32>
    %23 = arith.mulf %21, %22 : vector<8x32xf32>
    %24 = vector.broadcast %3 : vector<1x32xf32> to vector<8x32xf32>
    %25 = arith.addf %23, %24 : vector<8x32xf32>
    %c0_10 = arith.constant 0 : index
    %c0_11 = arith.constant 0 : index
    %26 = vector.load %arg5[%c0_10, %c0_11] : memref<32x32xf32, #tpu.memory_space<vmem>>, vector<32x32xf32>
    %cst_12 = arith.constant dense<0.000000e+00> : vector<8x32xf32>
    %27 = tpu.matmul %25, %26, %cst_12 {dimension_numbers = #tpu.dot_dimension_numbers<[1], [0], [0], [1], [0, 0, 1, 1], [], []>} : vector<8x32xf32>, vector<32x32xf32>, vector<8x32xf32> -> vector<8x32xf32>
    %c0_13 = arith.constant 0 : index
    %c0_14 = arith.constant 0 : index
    %28 = vector.load %arg6[%c0_13, %c0_14] : memref<1x32xf32, #tpu.memory_space<vmem>>, vector<1x32xf32>
    %29 = vector.broadcast %28 : vector<1x32xf32> to vector<8x32xf32>
    %30 = arith.addf %27, %29 : vector<8x32xf32>
    %c0_15 = arith.constant 0 : index
    %c0_16 = arith.constant 0 : index
    %31 = vector.load %arg7[%c0_15, %c0_16] : memref<32x32xf32, #tpu.memory_space<vmem>>, vector<32x32xf32>
    %cst_17 = arith.constant dense<0.000000e+00> : vector<8x32xf32>
    %32 = tpu.matmul %25, %31, %cst_17 {dimension_numbers = #tpu.dot_dimension_numbers<[1], [0], [0], [1], [0, 0, 1, 1], [], []>} : vector<8x32xf32>, vector<32x32xf32>, vector<8x32xf32> -> vector<8x32xf32>
    %c0_18 = arith.constant 0 : index
    %c0_19 = arith.constant 0 : index
    %33 = vector.load %arg8[%c0_18, %c0_19] : memref<1x32xf32, #tpu.memory_space<vmem>>, vector<1x32xf32>
    %34 = vector.broadcast %33 : vector<1x32xf32> to vector<8x32xf32>
    %35 = arith.addf %32, %34 : vector<8x32xf32>
    %36 = vector.shape_cast %30 : vector<8x32xf32> to vector<8x4x8xf32>
    %37 = tpu.transpose %36, [1, 0, 2] : vector<8x4x8xf32> -> vector<4x8x8xf32>
    %38 = vector.shape_cast %35 : vector<8x32xf32> to vector<8x4x8xf32>
    %39 = tpu.transpose %38, [1, 0, 2] : vector<8x4x8xf32> -> vector<4x8x8xf32>
    %c0_20 = arith.constant 0 : index
    %c0_21 = arith.constant 0 : index
    %c0_22 = arith.constant 0 : index
    %c0_23 = arith.constant 0 : index
    %40 = vector.load %arg9[%c0_20, %c0_21, %c0_22, %c0_23] : memref<1x4x8x8xf32, #tpu.memory_space<vmem>>, vector<1x4x8x8xf32>
    %41 = vector.shape_cast %40 : vector<1x4x8x8xf32> to vector<4x8x8xf32>
    %42 = vector.shape_cast %37 : vector<4x8x8xf32> to vector<1x4x8x8xf32>
    tpu.vector_store %arg9[%c0_20, %c0_21, %c0_22, %c0_23], %42 {strides = array<i32>} : memref<1x4x8x8xf32, #tpu.memory_space<vmem>>, vector<1x4x8x8xf32>,
    %c0_24 = arith.constant 0 : index
    %c0_25 = arith.constant 0 : index
    %c0_26 = arith.constant 0 : index
    %c0_27 = arith.constant 0 : index
    %43 = vector.load %arg10[%c0_24, %c0_25, %c0_26, %c0_27] : memref<1x4x8x8xf32, #tpu.memory_space<vmem>>, vector<1x4x8x8xf32>
    %44 = vector.shape_cast %43 : vector<1x4x8x8xf32> to vector<4x8x8xf32>
    %45 = vector.shape_cast %39 : vector<4x8x8xf32> to vector<1x4x8x8xf32>
    tpu.vector_store %arg10[%c0_24, %c0_25, %c0_26, %c0_27], %45 {strides = array<i32>} : memref<1x4x8x8xf32, #tpu.memory_space<vmem>>, vector<1x4x8x8xf32>,
    return
  }
  func.func @transform_0(%arg0: i32, %arg1: i32) -> (i32, i32, i32) {
    %c0_i32 = arith.constant 0 : i32
    %c0_i32_0 = arith.constant 0 : i32
    return %arg0, %arg1, %c0_i32 : i32, i32, i32
  }
  func.func @transform_1(%arg0: i32, %arg1: i32) -> (i32, i32) {
    %c0_i32 = arith.constant 0 : i32
    %c0_i32_0 = arith.constant 0 : i32
    %c0_i32_1 = arith.constant 0 : i32
    return %c0_i32, %c0_i32_0 : i32, i32
  }
  func.func @transform_2(%arg0: i32, %arg1: i32) -> (i32, i32) {
    %c0_i32 = arith.constant 0 : i32
    %c0_i32_0 = arith.constant 0 : i32
    %c0_i32_1 = arith.constant 0 : i32
    return %c0_i32, %c0_i32_0 : i32, i32
  }
  func.func @transform_3(%arg0: i32, %arg1: i32) -> (i32, i32) {
    %c0_i32 = arith.constant 0 : i32
    %c0_i32_0 = arith.constant 0 : i32
    %c0_i32_1 = arith.constant 0 : i32
    return %c0_i32, %c0_i32_0 : i32, i32
  }
  func.func @transform_4(%arg0: i32, %arg1: i32) -> (i32, i32) {
    %c0_i32 = arith.constant 0 : i32
    %c0_i32_0 = arith.constant 0 : i32
    %c0_i32_1 = arith.constant 0 : i32
    return %c0_i32, %c0_i32_0 : i32, i32
  }
  func.func @transform_5(%arg0: i32, %arg1: i32) -> (i32, i32) {
    %c0_i32 = arith.constant 0 : i32
    %c0_i32_0 = arith.constant 0 : i32
    %c0_i32_1 = arith.constant 0 : i32
    return %c0_i32, %c0_i32_0 : i32, i32
  }
  func.func @transform_6(%arg0: i32, %arg1: i32) -> (i32, i32) {
    %c0_i32 = arith.constant 0 : i32
    %c0_i32_0 = arith.constant 0 : i32
    %c0_i32_1 = arith.constant 0 : i32
    return %c0_i32, %c0_i32_0 : i32, i32
  }
  func.func @transform_7(%arg0: i32, %arg1: i32) -> (i32, i32, i32, i32) {
    %c0_i32 = arith.constant 0 : i32
    %c0_i32_0 = arith.constant 0 : i32
    %c0_i32_1 = arith.constant 0 : i32
    return %arg0, %c0_i32, %arg1, %c0_i32_0 : i32, i32, i32, i32
  }
  func.func @transform_8(%arg0: i32, %arg1: i32) -> (i32, i32, i32, i32) {
    %c0_i32 = arith.constant 0 : i32
    %c0_i32_0 = arith.constant 0 : i32
    %c0_i32_1 = arith.constant 0 : i32
    return %arg0, %c0_i32, %arg1, %c0_i32_0 : i32, i32, i32, i32
  }
}

</mosaic_0001>

<bundles_post_ra>
// kernel: tpu_custom_call.1
= control target key start
LH: loop header
LB: loop body
LE: loop exit
PB: predicated region body
PF: predicated region fallthrough
CT: control target
= control target key end

     0   :  { %s1821_s0 = inlined_call_operand.hbm [shape: f32[2,16,32], index: 0, kind: input, shape index: {}]   ;;  %s1822_s1 = inlined_call_operand.vmem [shape: f32[1,32], index: 1, kind: input, shape index: {}]   ;;  %s1823_s2 = inlined_call_operand.vmem [shape: f32[1,32], index: 2, kind: input, shape index: {}]   ;;  %s1824_s3 = inlined_call_operand.hbm [shape: f32[32,32], index: 3, kind: input, shape index: {}]   ;;  %s1825_s4 = inlined_call_operand.vmem [shape: f32[1,32], index: 4, kind: input, shape index: {}]   ;;  %s1826_s5 = inlined_call_operand.hbm [shape: f32[32,32], index: 5, kind: input, shape index: {}]   ;;  %s1827_s6 = inlined_call_operand.vmem [shape: f32[1,32], index: 6, kind: input, shape index: {}]   ;;  %s1828_s7 = inlined_call_operand.vmem [shape: f32[2,4,16,8], index: 7, kind: output, shape index: {0}]   ;;  %s1829_s8 = inlined_call_operand.vmem [shape: f32[2,4,16,8], index: 8, kind: output, shape index: {1}]  }
   0x1   :  { %1835 = sst [smem:[#allocation14_spill]] %s1824_s3 }
   0x2   :  { %1836 = sst [smem:[#allocation15_spill]] %s1826_s5 }
   0x3   :  { %1837 = sst [smem:[#allocation16_spill]] %s1828_s7 }
   0x4   :  { %1838 = sst [smem:[#allocation17_spill]] %s1829_s8 }
   0x5   :  { %14 = vsyncpa [#allocation3], 0 }
   0x6   :  { %16 = vsyncpa [#allocation3 + $0x1], 0 }
   0x7   :  { %17 = vsyncpa [#allocation5], 0  ;;  %s1504_s27 = smov 0   ;;  %s1506_s28 = smov 0  }
   0x8   :  { %s1508_s29 = smov 0   ;;  %s1510_s30 = smov 0  }
   0x9   :  { %s1512_s9 = smov 0   ;;  %s1514_s10 = smov 0  }
   0xa   :  { %s1516_s11 = smov 0   ;;  %s1518_s12 = smov 0  }
   0xb LB: > { %1839 = sst [smem:[#allocation11_spill]] %s1428_s30  ;;  %s1107_s13 = sadd.s32 4294967295, %s1444_s12   ;;  %s1444_s12 = sphi %s1518_s12, %s23_s12   ;;  %s1440_s11 = sphi %s1516_s11, %s1869_s11   ;;  %s1436_s10 = sphi %s1514_s10, %s1868_s10   ;;  %s1432_s9 = sphi %s1512_s9, %s1867_s9   ;;  %s1428_s30 = sphi %s1510_s30, %s1866_s30   ;;  %s1424_s29 = sphi %s1508_s29, %s1865_s29   ;;  %s1420_s28 = sphi %s1506_s28, %s1864_s28   ;;  %s1416_s27 = sphi %s1504_s27, %s1863_s27  }
   0xc   : > { %1840 = sst [smem:[#allocation12_spill]] %s1432_s9  ;;  %p57_p0 = scmp.ne.s32.totalorder %s1420_s28, %s1416_s27 }
   0xd   : > { %p1544_p1 = scmp.eq.s32.totalorder %s1107_s13, 0  ;;  %p1548_p2 = scmp.eq.s32.totalorder %s1107_s13, 3 }
   0xe   : > { %p1109_p3 = scmp.ge.s32.totalorder %s1444_s12, 1  ;;  %p250_p4 = scmp.lt.s32.totalorder %s1444_s12, 5 }
   0xf   : > { %s1841_s14 = scalar_select %p1544_p1, 1, 0 }
  0x10   : > { %s1842_s15 = scalar_select %p1548_p2, 1, 0 }
  0x11   : > { %p1556_p5 = por %p1544_p1, %p57_p0  ;;  %p1560_p6 = pnand %p1109_p3, %p250_p4 }
  0x12   : > { %s1446_s18 = smov [#allocation4]   ;;  %s1447_s21 = smov [#allocation6]  }
  0x13   : > { %s1843_s16 = scalar_select %p1556_p5, 1, 0 }
  0x14   : > { %s1844_s17 = scalar_select %p1560_p6, 1, 0 }
  0x15   : > { %s268_s19 = sshll.u32 %s1446_s18, 4  ;;  %p1194_p7 = pneg %p1560_p6  ;;  %s269_s19 = int_to_ptr.vmem [resolvable:$true] %s268_s19 }
  0x16   : > { %s284_s22 = sshll.u32 %s1447_s21, 4  ;;  %s1846_s3 = sld [smem:[#allocation14_spill]]  ;;  %s1572_s22 = int_to_ptr.vmem [resolvable:$true] %s284_s22 }
  0x17   : > { %p1568_p8 = pnand %p1194_p7, %p1544_p1 }
  0x19   : > { %p1290_p10 = pneg %p1568_p8 }
  0x1c   : > { %s1288_s25 = scalar_lea.hbm %s1846_s3, 512 }
  0x1d   : > { %p1289_p9 = scmp.ne.s32.totalorder %s1846_s3, %s1288_s25  ;;  %p1295_p13 = scmp.lt.u32.totalorder %s1288_s25, %s1846_s3 }
  0x1f   : > { %p1291_p11 = pnand %p1290_p10, %p1289_p9 }
  0x21   : > { %p1292_p12 = pneg %p1291_p11 }
  0x23   : > { %p1297_p0 = pnand %p1295_p13, %p1292_p12 }
  0x25   : > { %1300 = shalt.err (!%p1297_p0)
}
  0x26   : > { %s1301_s21 = scalar_lea.vmem %s269_s19, 512  ;;  %p1309_p1 = scmp.lt.s32.totalorder %s269_s19, %s269_s19 }
  0x27   : > { %p1302_p3 = scmp.ne.s32.totalorder %s269_s19, %s1301_s21  ;;  %p1310_p5 = scmp.lt.s32.totalorder %s1301_s21, %s1301_s21 }
  0x29   : > { %p1304_p4 = pnand %p1302_p3, %p1290_p10  ;;  %p1311_p6 = por %p1310_p5, %p1309_p1 }
  0x2b   : > { %p1305_p7 = pneg %p1304_p4 }
  0x2d   : > { %p1312_p2 = pnand %p1311_p6, %p1305_p7 }
  0x2f   : > { %1315 = shalt.err (!%p1312_p2)
}
  0x30   : > { %s1448_s23 = smov 128   ;;  %s1449_s24 = smov 8  }
  0x31   : > { %1197 = dma.hbm_to_vmem [thread:$0]  (!%p1568_p8), %s1846_s3, 512, %s269_s19, [#allocation5], %s1448_s23, %s1448_s23, %s1449_s24  }
  0x32   : > { %s1847_s5 = sld [smem:[#allocation15_spill]] }
  0x38   : > { %s1316_s18 = scalar_lea.hbm %s1847_s5, 512 }
  0x39   : > { %p1317_p9 = scmp.ne.s32.totalorder %s1847_s5, %s1316_s18  ;;  %p1323_p5 = scmp.lt.u32.totalorder %s1316_s18, %s1847_s5 }
  0x3b   : > { %p1319_p1 = pnand %p1317_p9, %p1290_p10 }
  0x3d   : > { %p1320_p2 = pneg %p1319_p1 }
  0x3f   : > { %p1325_p6 = pnand %p1323_p5, %p1320_p2 }
  0x41   : > { %1328 = shalt.err (!%p1325_p6)
}
  0x42   : > { %s1329_s19 = scalar_lea.vmem %s1572_s22, 512  ;;  %p1337_p0 = scmp.lt.s32.totalorder %s1572_s22, %s1572_s22 }
  0x43   : > { %p1330_p11 = scmp.ne.s32.totalorder %s1572_s22, %s1329_s19  ;;  %p1338_p3 = scmp.lt.s32.totalorder %s1329_s19, %s1329_s19 }
  0x45   : > { %p1332_p12 = pnand %p1330_p11, %p1290_p10  ;;  %p1339_p4 = por %p1338_p3, %p1337_p0 }
  0x47   : > { %p1333_p13 = pneg %p1332_p12 }
  0x49   : > { %p1340_p7 = pnand %p1339_p4, %p1333_p13 }
  0x4b   : > { %1343 = shalt.err (!%p1340_p7)
}
  0x4c   : > { %1200 = dma.hbm_to_vmem [thread:$0]  (!%p1568_p8), %s1847_s5, 512, %s1572_s22, [#allocation5], %s1448_s23, %s1448_s23, %s1449_s24  }
  0x4d   : > { %s32_s30 = sadd.s32 1, %s1436_s10  ;;  %s35_s20 = sadd.s32 1, %s1440_s11 }
  0x4e   : > { %p33_p10 = scmp.ge.s32.totalorder %s32_s30, 2  ;;  %s44_s25 = sadd.s32 1, %s1424_s29 }
  0x4f   : > { %p51_p9 = scmp.ne.s32.totalorder %s1424_s29, %s1420_s28  ;;  %p52_p1 = scmp.eq.s32.totalorder %s1444_s12, 0 }
  0x50   : > { %s1871_s30 = smov (%p33_p10, %s32_s30), 0  ;;  %s1873_s20 = smov (!%p33_p10, %s35_s20), %s1440_s11 }
  0x51   : > { %1848 = sst [smem:[#allocation13_spill]] %s1871_s30  ;;  %s40_s26 = ssub.s32 %s1436_s10, %s1871_s30 }
  0x52   : > { %p37_p2 = scmp.ge.s32.totalorder %s1873_s20, 2  ;;  %p1849_p5 = scmp.ne.s32.totalorder %s1842_s15, 0 }
  0x53   : > { %p1638_p8 = por %p52_p1, %p51_p9  ;;  %p1207_p11 = scmp.lt.s32.totalorder %s1444_s12, 4 }
  0x54   : > { %p1634_p6 = por %p1849_p5, %p51_p9  ;;  %s1875_s20 = smov (%p37_p2, %s1873_s20), 0 }
  0x55   : > { %s301_s23 = sand.u32 1, %s1424_s29   ;;  %s1114_s24 = sshll.u32 %s1440_s11, 1 }
  0x56   : > { %s39_s13 = ssub.s32 %s1440_s11, %s1875_s20  ;;  %s1113_s21 = sshll.u32 %s301_s23, 3 }
  0x57   : > { %s41_s18 = sor.u32 %s40_s26, %s39_s13  ;;  %s310_s15 = sadd.s32 %s1436_s10, %s1114_s24 }
  0x58   : > { %p42_p12 = scmp.eq.s32.totalorder %s41_s18, 0  ;;  %s305_s19 = scalar_lea.vmem [#allocation2], %s1113_s21 }
  0x59   : > { %s314_s7 = sshll.u32 %s305_s19, 4  ;;  %s1115_s3 = sshll.u32 %s310_s15, 7  ;;  %s1653_s7 = int_to_ptr.vmem [resolvable:$true] %s314_s7 }
  0x5a   : > { %s1651_s8 = scalar_select %p42_p12, %s1424_s29, %s44_s25  }
  0x5b   : > { %s1658_s9 = scalar_lea.hbm %s1821_s0, %s1115_s3  ;;  %p1664_p13 = pnand %p1207_p11, %p1638_p8 }
  0x5c   : > { %s302_s25 = scalar_lea.sflag [#allocation3], %s301_s23  ;;  %s1344_s24 = scalar_lea.hbm %s1658_s9, 128 }
  0x5d   : > { %p1345_p0 = scmp.ne.s32.totalorder %s1658_s9, %s1344_s24  ;;  %p1346_p3 = pneg %p1664_p13 }
  0x5e   : > { %s1349_s30 = scalar_lea.hbm %s1821_s0, 512  ;;  %p1350_p10 = scmp.lt.u32.totalorder %s1658_s9, %s1821_s0 }
  0x5f   : > { %p1347_p4 = pnand %p1346_p3, %p1345_p0  ;;  %p1351_p9 = scmp.lt.u32.totalorder %s1349_s30, %s1344_s24 }
  0x60   : > { %p1353_p2 = scmp.lt.u32.totalorder %s1344_s24, %s1658_s9 }
  0x61   : > { %p1348_p7 = pneg %p1347_p4  ;;  %p1352_p1 = por %p1351_p9, %p1350_p10 }
  0x63   : > { %p1354_p5 = por %p1353_p2, %p1352_p1 }
  0x65   : > { %p1355_p8 = pnand %p1354_p5, %p1348_p7 }
  0x67   : > { %1358 = shalt.err (!%p1355_p8)
}
  0x68   : > { %s1359_s23 = scalar_lea.vmem %s1653_s7, 128  ;;  %s1450_s18 = smov [#allocation2]  }
  0x69   : > { %p1360_p11 = scmp.ne.s32.totalorder %s1653_s7, %s1359_s23  ;;  %s1364_s21 = sshll.u32 %s1450_s18, 4  ;;  %s1365_s21 = int_to_ptr.vmem [resolvable:$false] %s1364_s21 }
  0x6a   : > { %s1366_s15 = scalar_lea.vmem %s1365_s21, 256  ;;  %p1367_p4 = scmp.lt.s32.totalorder %s1653_s7, %s1365_s21 }
  0x6b   : > { %p1362_p12 = pnand %p1360_p11, %p1346_p3  ;;  %p1368_p10 = scmp.lt.s32.totalorder %s1366_s15, %s1359_s23 }
  0x6d   : > { %p1363_p0 = pneg %p1362_p12  ;;  %p1369_p9 = por %p1368_p10, %p1367_p4 }
  0x6f   : > { %p1370_p1 = pnand %p1369_p9, %p1363_p0 }
  0x71   : > { %1373 = shalt.err (!%p1370_p1)
}
  0x72   : > { %1204 = dma.hbm_to_vmem [thread:$0]  (!%p1664_p13), %s1658_s9, 128, %s1653_s7, %s302_s25  }
  0x73   : > { %p1853_p7 = scmp.ne.s32.totalorder %s1844_s17, 0 }
  0x74   : > { %s1696_s19 = sand.u32 (!%p1853_p7), 1, %s1420_s28   ;;  %p1854_p3 = scmp.ne.s32.totalorder (!%p1853_p7), %s1843_s16, 0 }
  0x75   : > { %323 = sbr.rel (%p1853_p7) target bundleno = 821 (0x335), region = 48  ;;  %s1117_s24 = sshll.u32 (!%p1853_p7), %s1696_s19, 3 }
  0x76   : > { %s326_s3 = scalar_lea.sflag (!%p1853_p7), [#allocation3], %s1696_s19  ;;  %s329_s5 = scalar_lea.vmem (!%p1853_p7), [#allocation2], %s1117_s24 }
  0x7c   : > { %1407 = dma.done.wait (%p1854_p3), %s326_s3, 128  }
  0x7d   : > { %1409 = vsyncadd (%p1854_p3), %s326_s3, 4294967168  ;;  %p1855_p2 = scmp.ne.s32.totalorder %s1841_s14, 0 }
  0x7f   : > { %1411 = dma.done.wait (%p1855_p2), [#allocation5], 1024  }
  0x80   : > { %1413 = vsyncadd (%p1855_p2), [#allocation5], 4294966272  ;;  %vm376_vm0 = vcmask 261120   ;;  %v373_v0 = vld [vmem:[%s329_s5] sm:$0xff]  ;;  %v405_v7 = vld [vmem:[#allocation4] sm:$0xff]  ;;  %v1451_v10 = vmov 0.0|0.0   ;;  %v585_v40 = vlaneseq }
  0x81   : > { %v377_v1 = vsel %vm376_vm0, %v373_v0, 0.0  ;;  %v406_v8 = vld [vmem:[#allocation4 + $0x8] sm:$0xff]  ;;  %v489_v9 = vld [vmem:[#allocation6] sm:$0xff]  ;;  %1172 = vmatprep.subr.bf16.mxu0 %v1451_v10  ;;  %1178 = vmatprep.subr.bf16.mxu1 %v1451_v10  ;;  %v407_v13 = vld [vmem:[#allocation4 + $0x10] sm:$0xff]  ;;  %vm1452_vm1 = vmmov 0   ;;  %v1453_v18 = vmov 0.0  }
  0x82   : > { %378 = vadd.xlane.f32.xlu0 %v377_v1  ;;  %v1173_v11 = vpack.c.bf16 %v406_v8, %v405_v7  ;;  %v490_v12 = vld [vmem:[#allocation6 + $0x8] sm:$0xff]  ;;  %v408_v14 = vld [vmem:[#allocation4 + $0x18] sm:$0xff]  ;;  %v491_v16 = vld [vmem:[#allocation6 + $0x10] sm:$0xff]  ;;  %1158 = vmatprep.mubr.msk.f32.mxu0 %vm1452_vm1, %v1453_v18  ;;  %s1454_s25 = smov 104   ;;  %s1455_s30 = smov 120   ;;  %v586_v44 = vshrl.u32 %v585_v40, 7 }
  0x83   : > { %v1179_v15 = vpack.c.bf16 %v490_v12, %v489_v9  ;;  %v492_v17 = vld [vmem:[#allocation6 + $0x18] sm:$0xff]  ;;  %1169 = vmatprep.mubr.msk.f32.mxu1 %vm1452_vm1, %v1453_v18  ;;  %v1176_v19 = vpack.c.bf16 %v408_v14, %v407_v13  ;;  %v1122_v25 = vld [vmem:[%s1822_s1] ss:$0 sm:$0xff]  ;;  %s1456_s23 = smov 112   ;;  %v1457_v38 = vmov 1983009808  }
  0x84   : > { %1174 = vmatpush3.bf16.msra.mxu0 %v1173_v11  ;;  %v1182_v20 = vpack.c.bf16 %v492_v17, %v491_v16  ;;  %v1123_v27 = vld [vmem:[%s1823_s2] ss:$0 sm:$0xff]  ;;  %v583_v39 = vunpack.c.l.s4 %v1457_v38  ;;  %v1458_v41 = vmov 1934713408   ;;  %s1120_s18 = sshll.u32 %s1696_s19, 5  ;;  %vm862_vm2 = vcmask 64512  }
  0x85   : > { %1180 = vmatpush3.bf16.msra.mxu1 %v1179_v15  ;;  %1175 = vmatprep.subr.bf16.mxu0 %v1451_v10  ;;  %v1124_v30 = vld [vmem:[%s1825_s4] ss:$0 sm:$0xff]  ;;  %v615_v42 = vunpack.c.l.s4 %v1458_v41  ;;  %s1751_s21 = scalar_lea.vmem [#allocation7], %s1120_s18  ;;  %s372_s15 = scalar_lea.vmem [#allocation8], %s1120_s18 }
  0x86   : > { %1181 = vmatprep.subr.bf16.mxu1 %v1451_v10  ;;  %v1126_v36 = vld [vmem:[%s1827_s6] ss:$0 sm:$0xff]  ;;  %v584_v43 = vunpack.c.0.s8 %v583_v39  ;;  %s1856_s24 = sld [smem:[#allocation12_spill]] (%p1634_p6)  ;;  %s1857_s3 = sld [smem:[#allocation11_spill]] (%p1634_p6) }
  0x87   : > { %v616_v47 = vunpack.c.0.s8 %v615_v42  ;;  %s1858_s17 = sld [smem:[#allocation16_spill]] (%p1634_p6) }
  0x88   : > { %1177 = vmatpush3.bf16.msra.mxu0 %v1176_v19  ;;  %v1724_v48 = vsub.s32 %v584_v43, %v586_v44 }
  0x89   : > { %1183 = vmatpush3.bf16.msra.mxu1 %v1182_v20  ;;  %v1726_v54 = vsub.s32 %v616_v47, %v586_v44 }
  0x8c   : > { %s1134_s5 = sshll.u32 (%p1634_p6), %s1856_s24, 3 }
  0x8d   : > { %s883_s19 = sadd.s32 (%p1634_p6), %s1857_s3, %s1134_s5 }
  0x8e   : > { %s1135_s9 = sshll.u32 (%p1634_p6), %s883_s19, 3 }
  0x8f   : > { %s885_s7 = scalar_lea.vmem (%p1634_p6), %s1858_s17, %s1135_s9 }
 0x10f   : > { %v379_v2 = vpop.xlane.xlu0 %378 }
 0x110   : > { %v381_v3 = vmul.f32 0.03125, %v379_v2 }
 0x112   : > { %v382_v4 = vsub.f32 %v373_v0, %v381_v3 }
 0x114   : > { %v383_v5 = vmul.f32 %v382_v4, %v382_v4 }
 0x116   : > { %v384_v6 = vsel %vm376_vm0, %v383_v5, 0.0 }
 0x117   : > { %385 = vadd.xlane.f32.xlu0 %v384_v6 }
 0x1a4   : > { %v386_v21 = vpop.xlane.xlu0 %385 }
 0x1a5   : > { %v387_v22 = vmul.f32 0.03125, %v386_v21 }
 0x1a7   : > { %v388_v23 = vadd.f32 1e-05, %v387_v22 }
 0x1a9   : > { %1286 = vrsqrt.f32 %v388_v23 }
 0x1b3   : > { %v1287_v24 = vpop.eup %1286 }
 0x1b4   : > { %v390_v26 = vmul.f32 %v1287_v24, %v382_v4 }
 0x1b6   : > { %v397_v28 = vmul.f32 %v1122_v25, %v390_v26 }
 0x1b8   : > { %v404_v29 = vadd.f32 %v1123_v27, %v397_v28 }
 0x1ba   : > { %1159 = vmatmul.mubr.msk.f32.vlgmr.msra.gmra.mrb[0].mxu0 %vm376_vm0, %v404_v29  ;;  %1170 = vmatmul.mubr.msk.f32.vlgmr.msra.gmra.mrb[0].mxu1 %vm376_vm0, %v404_v29 }
 0x28d   : > { %v485_v31 = vpop.f32.mrb[0].mxu0  ;;  %v566_v32 = vpop.f32.mrb[0].mxu1 }
 0x28e   : > { %v486_v33 = vadd.f32 %v1124_v30, %v485_v31  ;;  %v1160_v34 = vpop.f32.mrb[1].mxu0  ;;  %v1171_v35 = vpop.f32.mrb[1].mxu1  ;;  %v567_v37 = vadd.f32 %v1126_v36, %v566_v32 }
 0x290   : > { %577 = vrot.lane.b32.xlu0 %v486_v33, %s1454_s25  ;;  %571 = vrot.lane.b32.xlu1 %v486_v33, %s1455_s30 }
 0x294   : > { %574 = vrot.lane.b32.xlu1 %v486_v33, %s1456_s23 }
 0x298   : > { %717 = vrot.lane.b32.xlu1 %v567_v37, %s1455_s30 }
 0x29c   : > { %720 = vrot.lane.b32.xlu1 %v567_v37, %s1456_s23 }
 0x2a0   : > { %723 = vrot.lane.b32.xlu1 %v567_v37, %s1454_s25 }
 0x302   : > { %v578_v45 = vpop.permute.xlu0 %577  ;;  %v572_v46 = vpop.permute.xlu1 %571 }
 0x303   : > { %v596_v49 = vcombine.low %v572_v46, %v578_v45  ;;  %v597_v50 = vcombine.high %v572_v46, %v578_v45 }
 0x305   : > { %v604_v55 = vrot.slane %v596_v49, %v1724_v48  ;;  %v611_v56 = vrot.slane %v597_v50, %v1724_v48 }
 0x306   : > { %v575_v51 = vpop.permute.xlu1 %574 }
 0x307   : > { %v580_v52 = vcombine.low %v486_v33, %v575_v51  ;;  %v581_v53 = vcombine.high %v486_v33, %v575_v51 }
 0x309   : > { %v588_v57 = vrot.slane %v580_v52, %v1724_v48  ;;  %v595_v58 = vrot.slane %v581_v53, %v1724_v48 }
 0x30a   : > { %v718_v59 = vpop.permute.xlu1 %717 }
 0x30b   : > { %v612_v60 = vcombine.low %v588_v57, %v604_v55  ;;  %v613_v61 = vcombine.high %v588_v57, %v604_v55  ;;  %v628_v62 = vcombine.low %v595_v58, %v611_v56  ;;  %v629_v63 = vcombine.high %v595_v58, %v611_v56 }
 0x30d   : > { %v620_v0 = vrot.slane %v612_v60, %v1726_v54  ;;  %v627_v1 = vrot.slane %v613_v61, %v1726_v54  ;;  %v636_v2 = vrot.slane %v628_v62, %v1726_v54  ;;  %v643_v3 = vrot.slane %v629_v63, %v1726_v54 }
 0x30e   : > { %v721_v4 = vpop.permute.xlu1 %720 }
 0x30f   : > { %v648_v5 = vcombine.low %v620_v0, %v627_v1  ;;  %v1128_v6 = vcombine.high %v620_v0, %v627_v1  ;;  %v664_v7 = vcombine.low %v636_v2, %v643_v3  ;;  %v1129_v8 = vcombine.high %v636_v2, %v643_v3 }
 0x310   : > { %v726_v13 = vcombine.low %v567_v37, %v721_v4  ;;  %v727_v14 = vcombine.high %v567_v37, %v721_v4 }
 0x311   : > { %v655_v9 = vrot.slane %v648_v5, %v1724_v48  ;;  %v663_v10 = vrot.slane %v1128_v6, %v1724_v48  ;;  %v671_v11 = vrot.slane %v664_v7, %v1724_v48  ;;  %v679_v12 = vrot.slane %v1129_v8, %v1724_v48 }
 0x312   : > { %v724_v15 = vpop.permute.xlu1 %723  ;;  %v734_v26 = vrot.slane %v726_v13, %v1724_v48  ;;  %v741_v27 = vrot.slane %v727_v14, %v1724_v48 }
 0x313   : > { %v680_v16 = vcombine.low %v655_v9, %v663_v10  ;;  %v681_v17 = vcombine.high %v655_v9, %v663_v10  ;;  %v696_v18 = vcombine.low %v671_v11, %v679_v12  ;;  %v697_v19 = vcombine.high %v671_v11, %v679_v12 }
 0x314   : > { %v742_v20 = vcombine.low %v718_v59, %v724_v15  ;;  %v743_v21 = vcombine.high %v718_v59, %v724_v15 }
 0x315   : > { %v688_v22 = vrot.slane %v680_v16, %v1726_v54  ;;  %v695_v23 = vrot.slane %v681_v17, %v1726_v54  ;;  %v704_v24 = vrot.slane %v696_v18, %v1726_v54  ;;  %v711_v25 = vrot.slane %v697_v19, %v1726_v54 }
 0x316   : > { %v750_v28 = vrot.slane %v742_v20, %v1724_v48  ;;  %v757_v29 = vrot.slane %v743_v21, %v1724_v48 }
 0x317   : > { %v712_v30 = vcombine.low %v688_v22, %v704_v24  ;;  %v713_v31 = vcombine.high %v688_v22, %v704_v24  ;;  %v714_v32 = vcombine.low %v695_v23, %v711_v25  ;;  %v715_v33 = vcombine.high %v695_v23, %v711_v25 }
 0x318   : > { %v758_v34 = vcombine.low %v734_v26, %v750_v28  ;;  %v759_v35 = vcombine.high %v734_v26, %v750_v28  ;;  %v774_v36 = vcombine.low %v741_v27, %v757_v29  ;;  %v775_v37 = vcombine.high %v741_v27, %v757_v29 }
 0x319   : > { %863 = vst.msk [vmem:[%s1751_s21] sm:$0xff] %vm862_vm2, %v712_v30  ;;  %864 = vst.msk [vmem:[%s1751_s21 + $0x8] sm:$0xff] %vm862_vm2, %v713_v31 }
 0x31a   : > { %865 = vst.msk [vmem:[%s1751_s21 + $0x10] sm:$0xff] %vm862_vm2, %v714_v32  ;;  %866 = vst.msk [vmem:[%s1751_s21 + $0x18] sm:$0xff] %vm862_vm2, %v715_v33  ;;  %v766_v38 = vrot.slane %v758_v34, %v1726_v54  ;;  %v773_v39 = vrot.slane %v759_v35, %v1726_v54  ;;  %v782_v40 = vrot.slane %v774_v36, %v1726_v54 }
 0x31b   : > { %v789_v41 = vrot.slane %v775_v37, %v1726_v54 }
 0x31c   : > { %v794_v42 = vcombine.low %v766_v38, %v773_v39  ;;  %v1130_v43 = vcombine.high %v766_v38, %v773_v39 }
 0x31d   : > { %v810_v44 = vcombine.low %v782_v40, %v789_v41  ;;  %v1131_v45 = vcombine.high %v782_v40, %v789_v41 }
 0x31e   : > { %v801_v46 = vrot.slane %v794_v42, %v1724_v48  ;;  %v809_v47 = vrot.slane %v1130_v43, %v1724_v48 }
 0x31f   : > { %v817_v49 = vrot.slane %v810_v44, %v1724_v48  ;;  %v825_v50 = vrot.slane %v1131_v45, %v1724_v48 }
 0x320   : > { %v826_v51 = vcombine.low %v801_v46, %v809_v47  ;;  %v827_v52 = vcombine.high %v801_v46, %v809_v47  ;;  %v919_v48 = vld [vmem:[%s1751_s21] sm:$0xff] (%p1634_p6) }
 0x321   : > { %v842_v53 = vcombine.low %v817_v49, %v825_v50  ;;  %v843_v55 = vcombine.high %v817_v49, %v825_v50  ;;  %v923_v0 = vld [vmem:[%s1751_s21 + $0x10] sm:$0xff] (%p1634_p6)  ;;  %v925_v1 = vld [vmem:[%s1751_s21 + $0x18] sm:$0xff] (%p1634_p6)  ;;  %920 = vst [vmem:[%s885_s7] sm:$0xff] (%p1634_p6), %v919_v48 }
 0x322   : > { %v834_v56 = vrot.slane %v826_v51, %v1726_v54  ;;  %v841_v57 = vrot.slane %v827_v52, %v1726_v54  ;;  %881 = sbr.rel (!%p1634_p6) target bundleno = 809 (0x329), region = 64  ;;  %924 = vst [vmem:[%s885_s7 + $0x20] sm:$0xff] (%p1634_p6), %v923_v0  ;;  %926 = vst [vmem:[%s885_s7 + $0x30] sm:$0xff] (%p1634_p6), %v925_v1 }
 0x323   : > { %v850_v58 = vrot.slane %v842_v53, %v1726_v54  ;;  %v857_v59 = vrot.slane %v843_v55, %v1726_v54  ;;  %v921_v54 = vld [vmem:[%s1751_s21 + $0x8] sm:$0xff] (%p1634_p6) }
 0x324   : > { %922 = vst [vmem:[%s885_s7 + $0x10] sm:$0xff] (%p1634_p6), %v921_v54 }
 0x325   : > { %v858_v60 = vcombine.low %v834_v56, %v850_v58  ;;  %v859_v61 = vcombine.high %v834_v56, %v850_v58  ;;  %v860_v62 = vcombine.low %v841_v57, %v857_v59  ;;  %v861_v63 = vcombine.high %v841_v57, %v857_v59 }
 0x327   : > { %867 = vst.msk [vmem:[%s372_s15] sm:$0xff] %vm862_vm2, %v858_v60  ;;  %868 = vst.msk [vmem:[%s372_s15 + $0x8] sm:$0xff] %vm862_vm2, %v859_v61 }
 0x328   : > { %869 = vst.msk [vmem:[%s372_s15 + $0x10] sm:$0xff] %vm862_vm2, %v860_v62  ;;  %870 = vst.msk [vmem:[%s372_s15 + $0x18] sm:$0xff] %vm862_vm2, %v861_v63 }
 0x329 PF: > { %932 = sbr.rel (!%p1634_p6) target bundleno = 821 (0x335), region = 102  ;;  %s1859_s26 = sld [smem:[#allocation12_spill]] (%p1634_p6) }
 0x32a   : > { %s1860_s25 = sld [smem:[#allocation11_spill]] (%p1634_p6)  ;;  %s1861_s21 = sld [smem:[#allocation17_spill]] (%p1634_p6) }
 0x32e   : > { %v970_v2 = vld [vmem:[%s372_s15] sm:$0xff] (%p1634_p6)  ;;  %v972_v3 = vld [vmem:[%s372_s15 + $0x8] sm:$0xff] (%p1634_p6) }
 0x32f   : > { %s1136_s30 = sshll.u32 (%p1634_p6), %s1859_s26, 3  ;;  %v974_v4 = vld [vmem:[%s372_s15 + $0x10] sm:$0xff] (%p1634_p6)  ;;  %v976_v5 = vld [vmem:[%s372_s15 + $0x18] sm:$0xff] (%p1634_p6) }
 0x330   : > { %s934_s22 = sadd.s32 %s1860_s25, %s1136_s30 }
 0x331   : > { %s1137_s13 = sshll.u32 %s934_s22, 3 }
 0x332   : > { %s936_s24 = scalar_lea.vmem %s1861_s21, %s1137_s13 }
 0x333   : > { %971 = vst [vmem:[%s936_s24] sm:$0xff] %v970_v2  ;;  %973 = vst [vmem:[%s936_s24 + $0x10] sm:$0xff] %v972_v3 }
 0x334   : > { %975 = vst [vmem:[%s936_s24 + $0x20] sm:$0xff] %v974_v4  ;;  %977 = vst [vmem:[%s936_s24 + $0x30] sm:$0xff] %v976_v5 }
 0x335 PF: > { %s23_s12 = sadd.s32 1, %s1444_s12   ;;  %s1862_s15 = sld [smem:[#allocation13_spill]] }
 0x336   : > { %p20_p6 = scmp.ge.s32.totalorder %s23_s12, 6   ;;  %s1863_s27 = smov %s1420_s28 }
 0x337   : > { %s1864_s28 = smov %s1424_s29  ;;  %s1865_s29 = smov %s1651_s8 }
 0x338   : > { %s1866_s30 = smov %s1436_s10  ;;  %s1867_s9 = smov %s1440_s11 }
 0x339   : > { %s1869_s11 = smov %s1875_s20  ;;  %22 = sbr.rel (!%p20_p6) target bundleno = 11 (0xb), region = 184 }
 0x33b   : > { %s1868_s10 = smov %s1862_s15 }
 0x340   :  { %1000 = vsyncpa [#allocation3], 1 }
 0x341   :  { %1002 = vsyncpa [#allocation3 + $0x1], 1 }
 0x342   :  { %1003 = vsyncpa [#allocation5], 1 }

</bundles_post_ra>
